<compile_context>
chip_gen: v5e
topology: v5e:2x2
jax: 0.10.0
libtpu: 0.0.40
codegen_flags: <defaults>
</compile_context>

<pallas_src>
import math

import jax
import jax.numpy as jnp
from jax.experimental import pallas as pl
from jax.experimental.pallas import tpu as pltpu


def ma_gating_kernel(x_ref, g_ref, b_ref, o_ref):
    # x_ref: (tm, tf) activation tile
    # g_ref: (1, tf)  precomputed exp(a) slice (broadcast over rows)
    # b_ref: (1, tf)  bias slice (broadcast over rows)
    o_ref[...] = x_ref[...] * g_ref[...] + b_ref[...]


_TARGET_TILE_BYTES = 4 << 20  # ~4 MiB x tiles (≈ HBM-roofline plateau)


def _pick_lane_tile(F):
    # Largest lane-dense (multiple-of-128) chunk dividing F; full extent
    # (always layout-legal) when F is not a multiple of 128.
    if F % 128 != 0:
        return F
    for c in (8192, 4096, 2048, 1024, 512, 256, 128):
        if F % c == 0:
            return c
    return F


def ma_gating_pallas(x, a, b):
    """x: (..., S, D); a, b: (S, D). Returns x * exp(a) + b."""
    S, D = a.shape
    assert b.shape == (S, D)
    assert x.shape[-2:] == (S, D), "x must end in (S, d_model)"

    lead = x.shape[:-2]
    B = math.prod(lead) if lead else 1
    F = S * D

    x2 = x.reshape(B, F)
    # Hoist exp(a) out of the per-tile body: a is a tiny parameter, so compute
    # the gate once in f32 and cast gate/bias to the activation dtype so the
    # kernel does a native multiply-add without upcasting the whole x tile.
    gate2 = jnp.exp(a.astype(jnp.float32)).astype(x.dtype).reshape(1, F)
    b2 = b.astype(x.dtype).reshape(1, F)

    itemsize = jnp.dtype(x.dtype).itemsize
    tf = _pick_lane_tile(F)

    # Row tile: ~4 MiB per x tile, sublane-aligned (multiple of 8); use the
    # full row extent (always layout-legal) if the target exceeds B.
    tm = max(8, _TARGET_TILE_BYTES // max(1, tf * itemsize))
    tm = (tm // 8) * 8
    if tm >= B:
        tm = B

    n_row = pl.cdiv(B, tm)   # ragged last row block handled by Pallas masking
    n_lane = F // tf
    # v7x has 2 TensorCores: guarantee >=2 parallel grid steps when possible.
    if n_row * n_lane == 1 and F % 256 == 0:
        tf = F // 2
        n_lane = 2

    # Lane axis outermost so the gate/bias block index is constant across the
    # inner row loop and Pallas keeps them resident (no per-step re-fetch).
    grid = (n_lane, n_row)

    # VMEM budget sized from the actual buffers: double-buffered x + out
    # tiles, double-buffered gate/bias slices, plus headroom.  Kept above
    # v5e's 16 MiB scoped default and capped at 32 MiB (v7x-safe).
    tile_bytes = tm * tf * itemsize
    param_bytes = 2 * 2 * tf * itemsize
    vmem_bytes = 2 * (2 * tile_bytes) + param_bytes + (2 << 20)
    vmem_bytes = int(min(max(vmem_bytes, 16 << 20), 32 << 20))

    out = pl.pallas_call(
        ma_gating_kernel,
        out_shape=jax.ShapeDtypeStruct((B, F), x.dtype),
        grid_spec=pltpu.PrefetchScalarGridSpec(
            num_scalar_prefetch=0,
            grid=grid,
            in_specs=[
                pl.BlockSpec((tm, tf), lambda j, i: (i, j)),   # x tile
                pl.BlockSpec((1, tf), lambda j, i: (0, j)),    # exp(a) slice
                pl.BlockSpec((1, tf), lambda j, i: (0, j)),    # bias slice
            ],
            out_specs=pl.BlockSpec((tm, tf), lambda j, i: (i, j)),
        ),
        compiler_params=pltpu.CompilerParams(
            dimension_semantics=("parallel", "parallel"),
            vmem_limit_bytes=vmem_bytes,
        ),
    )(x2, gate2, b2)

    return out.reshape(x.shape)


def ma_gating_reference(x, a, b):
    return x * jnp.exp(a) + b


if __name__ == "__main__":
    # MaGating(d_model=32) applied to x of shape (batch=2, 64, 32).
    B, S, D = 2, 64, 32
    key = jax.random.PRNGKey(0)
    kx, ka, kb = jax.random.split(key, 3)

    x = jax.random.normal(kx, (B, S, D), dtype=jnp.float32)
    # Module inits a=0, b=1; perturb deterministically so the check is non-trivial.
    a = 0.1 * jax.random.normal(ka, (S, D), dtype=jnp.float32)
    b = 1.0 + 0.1 * jax.random.normal(kb, (S, D), dtype=jnp.float32)

    y = ma_gating_pallas(x, a, b)
    y = jax.block_until_ready(y)

    y_ref = ma_gating_reference(x, a, b)
    assert y.shape == (B, S, D)
    assert jnp.allclose(y, y_ref, atol=1e-5, rtol=1e-5), "mismatch vs reference"

    print("KERNEL_OK")
</pallas_src>

<mosaic_0001>
module attributes {stable_mosaic.version = 11 : i64} {
  func.func @ma_gating_kernel(%arg0: i32, %arg1: i32, %arg2: memref<2x1024xf32, #tpu.memory_space<vmem>>, %arg3: memref<1x1024xf32, #tpu.memory_space<vmem>>, %arg4: memref<1x1024xf32, #tpu.memory_space<vmem>>, %arg5: memref<2x1024xf32, #tpu.memory_space<vmem>>) attributes {dimension_semantics = [#tpu.dimension_semantics<parallel>, #tpu.dimension_semantics<parallel>], iteration_bounds = array<i64: 2, 1>, scalar_prefetch = 0 : i64, scratch_operands = 0 : i64, tpu.core_type = #tpu.core_type<tc>, window_params = [{transform_indices = @transform_0, window_bounds = array<i64: 2, 1024>}, {transform_indices = @transform_1, window_bounds = array<i64: 1, 1024>}, {transform_indices = @transform_2, window_bounds = array<i64: 1, 1024>}, {transform_indices = @transform_3, window_bounds = array<i64: 2, 1024>}]} {
    %c0 = arith.constant 0 : index
    %c0_0 = arith.constant 0 : index
    %0 = vector.load %arg2[%c0, %c0_0] : memref<2x1024xf32, #tpu.memory_space<vmem>>, vector<2x1024xf32>
    %c0_1 = arith.constant 0 : index
    %c0_2 = arith.constant 0 : index
    %1 = vector.load %arg3[%c0_1, %c0_2] : memref<1x1024xf32, #tpu.memory_space<vmem>>, vector<1x1024xf32>
    %2 = vector.broadcast %1 : vector<1x1024xf32> to vector<2x1024xf32>
    %3 = arith.mulf %0, %2 : vector<2x1024xf32>
    %c0_3 = arith.constant 0 : index
    %c0_4 = arith.constant 0 : index
    %4 = vector.load %arg4[%c0_3, %c0_4] : memref<1x1024xf32, #tpu.memory_space<vmem>>, vector<1x1024xf32>
    %5 = vector.broadcast %4 : vector<1x1024xf32> to vector<2x1024xf32>
    %6 = arith.addf %3, %5 : vector<2x1024xf32>
    %c0_5 = arith.constant 0 : index
    %c0_6 = arith.constant 0 : index
    %7 = vector.load %arg5[%c0_5, %c0_6] : memref<2x1024xf32, #tpu.memory_space<vmem>>, vector<2x1024xf32>
    tpu.vector_store %arg5[%c0_5, %c0_6], %6 {strides = array<i32>} : memref<2x1024xf32, #tpu.memory_space<vmem>>, vector<2x1024xf32>,
    return
  }
  func.func @transform_0(%arg0: i32, %arg1: i32) -> (i32, i32) {
    %c0_i32 = arith.constant 0 : i32
    return %arg1, %arg0 : i32, i32
  }
  func.func @transform_1(%arg0: i32, %arg1: i32) -> (i32, i32) {
    %c0_i32 = arith.constant 0 : i32
    %c0_i32_0 = arith.constant 0 : i32
    return %c0_i32, %arg0 : i32, i32
  }
  func.func @transform_2(%arg0: i32, %arg1: i32) -> (i32, i32) {
    %c0_i32 = arith.constant 0 : i32
    %c0_i32_0 = arith.constant 0 : i32
    return %c0_i32, %arg0 : i32, i32
  }
  func.func @transform_3(%arg0: i32, %arg1: i32) -> (i32, i32) {
    %c0_i32 = arith.constant 0 : i32
    return %arg1, %arg0 : i32, i32
  }
}

</mosaic_0001>

<bundles_post_ra>
// kernel: tpu_custom_call.1
= control target key start
LH: loop header
LB: loop body
LE: loop exit
PB: predicated region body
PF: predicated region fallthrough
CT: control target
= control target key end

     0   :  { %s958_s0 = inlined_call_operand.hbm [shape: f32[2,2048], index: 0, kind: input, shape index: {}]   ;;  %s959_s1 = inlined_call_operand.hbm [shape: f32[1,2048], index: 1, kind: input, shape index: {}]   ;;  %s960_s2 = inlined_call_operand.hbm [shape: f32[1,2048], index: 2, kind: input, shape index: {}]   ;;  %s961_s3 = inlined_call_operand.hbm [shape: f32[2,2048], index: 3, kind: output, shape index: {}]  }
   0x1   :  { %963 = sst [smem:[#allocation14_spill]] %s959_s1 }
   0x2   :  { %8 = vsyncpa [#allocation3], 0 }
   0x3   :  { %10 = vsyncpa [#allocation3 + $0x1], 0 }
   0x4   :  { %11 = vsyncpa [#allocation6], 0 }
   0x5   :  { %13 = vsyncpa [#allocation6 + $0x1], 0 }
   0x6   :  { %14 = vsyncpa [#allocation4], 0 }
   0x7   :  { %16 = vsyncpa [#allocation4 + $0x1], 0  ;;  %s784_s12 = smov 0   ;;  %s786_s13 = smov 0  }
   0x8   :  { %s788_s14 = smov 0   ;;  %s790_s15 = smov 0  }
   0x9   :  { %s792_s16 = smov 0   ;;  %s794_s17 = smov 0  }
   0xa LB: > { %s815_s18 = sadd.s32 4294967295, %s762_s17   ;;  %s492_s19 = sadd.s32 4294967294, %s762_s17   ;;  %s762_s17 = sphi %s794_s17, %s22_s17   ;;  %s758_s16 = sphi %s792_s16, %s979_s16   ;;  %s754_s15 = sphi %s790_s15, %s978_s15   ;;  %s750_s14 = sphi %s788_s14, %s977_s14   ;;  %s746_s13 = sphi %s786_s13, %s976_s13   ;;  %s742_s12 = sphi %s784_s12, %s975_s12  }
   0xb   : > { %s34_s20 = sadd.s32 1, %s758_s16  ;;  %s43_s21 = sadd.s32 1, %s750_s14 }
   0xc   : > { %p36_p0 = scmp.ge.s32.totalorder %s34_s20, 2  ;;  %p50_p1 = scmp.ne.s32.totalorder %s750_s14, %s746_s13 }
   0xd   : > { %p51_p2 = scmp.eq.s32.totalorder %s762_s17, 0  ;;  %p56_p3 = scmp.ne.s32.totalorder %s746_s13, %s742_s12 }
   0xe   : > { %s981_s20 = smov (%p36_p0, %s34_s20), 0  ;;  %p57_p5 = scmp.eq.s32.totalorder %s815_s18, 0 }
   0xf   : > { %964 = sst [smem:[#allocation12_spill]] %s981_s20  ;;  %p827_p4 = por %p51_p2, %p50_p1 }
  0x10   : > { %s39_s23 = ssub.s32 %s758_s16, %s981_s20  ;;  %p134_p6 = scmp.eq.s32.totalorder %s815_s18, 1 }
  0x11   : > { %p41_p7 = scmp.eq.s32.totalorder %s39_s23, 0  ;;  %p835_p8 = por %p57_p5, %p56_p3 }
  0x12   : > { %p839_p9 = por %p134_p6, %p50_p1  ;;  %p140_p10 = scmp.eq.s32.totalorder %s492_s19, 1 }
  0x13   : > { %s844_s26 = scalar_select %p41_p7, %s750_s14, %s43_s21  }
  0x14   : > { %p846_p11 = por %p140_p10, %p56_p3  ;;  %p494_p12 = scmp.ge.s32.totalorder %s762_s17, 2 }
  0x15   : > { %968 = sst [smem:[#allocation13_spill]] %s844_s26  ;;  %p536_p13 = scmp.lt.s32.totalorder %s762_s17, 2 }
  0x16   : > { %s160_s28 = sand.u32 1, %s750_s14   ;;  %s182_s29 = sand.u32 1, %s762_s17  }
  0x17   : > { %s498_s30 = sshll.u32 %s160_s28, 3  ;;  %p856_p0 = pnand %p536_p13, %p827_p4 }
  0x18   : > { %s499_s5 = sshll.u32 %s758_s16, 3  ;;  %s971_s1 = sld [smem:[#allocation14_spill]] }
  0x19   : > { %s186_s10 = scalar_lea.vmem [#allocation5], %s498_s30  ;;  %s183_s19 = scalar_lea.sflag [#allocation6], %s182_s29 }
  0x1a   : > { %s194_s11 = sshll.u32 %s186_s10, 4  ;;  %s209_s23 = scalar_lea.hbm %s960_s2, %s499_s5  ;;  %s195_s11 = int_to_ptr.vmem [resolvable:$true] %s194_s11 }
  0x1b   : > { %p502_p1 = scmp.ge.s32.totalorder %s762_s17, 1  ;;  %p218_p2 = scmp.lt.s32.totalorder %s762_s17, 3 }
  0x1c   : > { %s495_s6 = sshll.u32 %s160_s28, 4  ;;  %s512_s7 = sshll.u32 %s758_s16, 4 }
  0x1d   : > { %p871_p3 = pnand %p502_p1, %p218_p2  ;;  %s164_s26 = scalar_lea.vmem [#allocation2], %s495_s6 }
  0x1e   : > { %s190_s8 = scalar_lea.hbm %s971_s1, %s499_s5  ;;  %s171_s1 = scalar_lea.hbm %s958_s0, %s512_s7 }
  0x1f   : > { %s192_s9 = sshll.u32 %s190_s8, 4  ;;  %s173_s29 = sshll.u32 %s171_s1, 4  ;;  %s193_s9 = int_to_ptr.hbm [resolvable:$true] %s192_s9  ;;  %s174_s29 = int_to_ptr.hbm [resolvable:$true] %s173_s29 }
  0x20   : > { %528 = dma.hbm_to_vmem [thread:$0]  (!%p856_p0), %s193_s9, 128, %s195_s11, %s183_s19  }
  0x21   : > { %s175_s9 = sshll.u32 %s164_s26, 4  ;;  %s161_s11 = scalar_lea.sflag [#allocation3], %s160_s28  ;;  %s176_s9 = int_to_ptr.vmem [resolvable:$true] %s175_s9 }
  0x22   : > { %525 = dma.hbm_to_vmem [thread:$0]  (!%p856_p0), %s174_s29, 256, %s176_s9, %s161_s11  }
  0x23   : > { %s211_s5 = sshll.u32 %s209_s23, 4  ;;  %s205_s21 = scalar_lea.vmem [#allocation7], %s498_s30  ;;  %s212_s5 = int_to_ptr.hbm [resolvable:$true] %s211_s5 }
  0x24   : > { %s213_s22 = sshll.u32 %s205_s21, 4  ;;  %222 = sbr.rel (%p871_p3) target bundleno = 65 (0x41), region = 32  ;;  %s214_s22 = int_to_ptr.vmem [resolvable:$true] %s213_s22 }
  0x25   : > { %531 = dma.hbm_to_vmem [thread:$0]  (!%p856_p0), %s212_s5, 128, %s214_s22, %s183_s19  }
  0x26   : > { %s886_s1 = sand.u32 (!%p871_p3), 1, %s746_s13  }
  0x27   : > { %s503_s26 = sshll.u32 (!%p871_p3), %s886_s1, 4  ;;  %s225_s28 = scalar_lea.sflag (!%p871_p3), [#allocation3], %s886_s1 }
  0x28   : > { %s892_s23 = scalar_lea.vmem (!%p871_p3), [#allocation2], %s503_s26 }
  0x29   : > { %729 = dma.done.wait (%p835_p8), %s225_s28, 256  }
  0x2a   : > { %731 = vsyncadd (%p835_p8), %s225_s28, 4294967040  ;;  %s234_s20 = sand.u32 1, %s815_s18   ;;  %s504_s30 = sshll.u32 %s886_s1, 3 }
  0x2b   : > { %s235_s4 = scalar_lea.sflag [#allocation6], %s234_s20  ;;  %s238_s19 = scalar_lea.vmem [#allocation5], %s504_s30 }
  0x2c   : > { %733 = dma.done.wait (%p835_p8), %s235_s4, 256  }
  0x2d   : > { %735 = vsyncadd (%p835_p8), %s235_s4, 4294967040  ;;  %v288_v0 = vld [vmem:[%s238_s19] sm:$0xff]  ;;  %vm304_vm0 = vcmask 1041408   ;;  %vm306_vm1 = vcmask 1045508   ;;  %vm308_vm2 = vcmask 1043456   ;;  %s248_s6 = scalar_lea.vmem [#allocation7], %s504_s30 }
  0x2e   : > { %v317_v1 = vld [vmem:[%s248_s6] sm:$0xff]  ;;  %v290_v2 = vperm.slane %v288_v0, 0  ;;  %v291_v3 = vperm.slane %v288_v0, 1  ;;  %v292_v4 = vperm.slane %v288_v0, 2  ;;  %v293_v5 = vperm.slane %v288_v0, 3  ;;  %v286_v14 = vld [vmem:[%s892_s23] sm:$0xff] }
  0x2f   : > { %v319_v6 = vperm.slane %v317_v1, 0  ;;  %v320_v7 = vperm.slane %v317_v1, 1  ;;  %v321_v8 = vperm.slane %v317_v1, 2  ;;  %v322_v9 = vperm.slane %v317_v1, 3  ;;  %s513_s18 = sshll.u32 %s754_s15, 4  ;;  %v287_v31 = vld [vmem:[%s892_s23 + $0x8] sm:$0xff] }
  0x30   : > { %v298_v10 = vrot.slane %v291_v3, 6  ;;  %v299_v11 = vrot.slane %v292_v4, 4  ;;  %v300_v12 = vrot.slane %v293_v5, 2  ;;  %v294_v13 = vperm.slane %v288_v0, 4  ;;  %s359_s15 = scalar_lea.hbm %s961_s3, %s513_s18  ;;  %s281_s8 = scalar_lea.vmem [#allocation8], %s503_s26 }
  0x31   : > { %v327_v15 = vrot.slane %v320_v7, 6  ;;  %v328_v16 = vrot.slane %v321_v8, 4  ;;  %v329_v17 = vrot.slane %v322_v9, 2  ;;  %v295_v18 = vperm.slane %v288_v0, 5  ;;  %s361_s10 = sshll.u32 %s281_s8, 4  ;;  %s363_s29 = sshll.u32 %s359_s15, 4  ;;  %s362_s10 = int_to_ptr.vmem [resolvable:$true] %s361_s10  ;;  %s364_s29 = int_to_ptr.hbm [resolvable:$true] %s363_s29 }
  0x32   : > { %v305_v19 = vsel %vm304_vm0, %v290_v2, %v298_v10  ;;  %v307_v20 = vsel %vm306_vm1, %v299_v11, %v300_v12  ;;  %v296_v21 = vperm.slane %v288_v0, 6  ;;  %v297_v22 = vperm.slane %v288_v0, 7  ;;  %s346_s9 = scalar_lea.sflag [#allocation4], %s886_s1  ;;  %s690_s11 = sshra.s32 %s364_s29, 4  ;;  %s691_s11 = int_to_ptr.hbm [resolvable:$true] %s690_s11 }
  0x33   : > { %v309_v23 = vsel %vm308_vm2, %v305_v19, %v307_v20  ;;  %v333_v24 = vsel %vm304_vm0, %v319_v6, %v327_v15  ;;  %v334_v25 = vsel %vm306_vm1, %v328_v16, %v329_v17  ;;  %v301_v26 = vrot.slane %v295_v18, 6  ;;  %s692_s5 = scalar_lea.hbm %s691_s11, 16  ;;  %s696_s26 = scalar_lea.hbm %s961_s3, 32 }
  0x34   : > { %v315_v27 = vmul.f32 %v309_v23, %v286_v14  ;;  %v335_v28 = vsel %vm308_vm2, %v333_v24, %v334_v25  ;;  %v302_v29 = vrot.slane %v296_v21, 4  ;;  %v303_v30 = vrot.slane %v297_v22, 2  ;;  %p693_p4 = scmp.ne.s32.totalorder %s691_s11, %s692_s5  ;;  %p697_p7 = scmp.lt.s32.totalorder %s691_s11, %s961_s3 }
  0x35   : > { %v310_v32 = vsel %vm304_vm0, %v294_v13, %v301_v26  ;;  %v323_v33 = vperm.slane %v317_v1, 4  ;;  %v324_v34 = vperm.slane %v317_v1, 5  ;;  %v325_v35 = vperm.slane %v317_v1, 6  ;;  %p698_p8 = scmp.lt.s32.totalorder %s696_s26, %s692_s5 }
  0x36   : > { %v341_v36 = vadd.f32 %v335_v28, %v315_v27  ;;  %v311_v37 = vsel %vm306_vm1, %v302_v29, %v303_v30  ;;  %v326_v38 = vperm.slane %v317_v1, 7  ;;  %p694_p5 = pnand %p693_p4, %p839_p9 }
  0x37   : > { %v312_v39 = vsel %vm308_vm2, %v310_v32, %v311_v37  ;;  %v330_v40 = vrot.slane %v324_v34, 6  ;;  %v331_v41 = vrot.slane %v325_v35, 4  ;;  %p699_p10 = por %p698_p8, %p697_p7 }
  0x38   : > { %343 = vst [vmem:[%s281_s8] sm:$0xff] %v341_v36  ;;  %v316_v42 = vmul.f32 %v312_v39, %v287_v31  ;;  %v332_v43 = vrot.slane %v326_v38, 2  ;;  %p695_p6 = pneg %p694_p5 }
  0x39   : > { %v336_v44 = vsel %vm304_vm0, %v323_v33, %v330_v40 }
  0x3a   : > { %v337_v45 = vsel %vm306_vm1, %v331_v41, %v332_v43  ;;  %p700_p13 = pnand %p699_p10, %p695_p6 }
  0x3b   : > { %v338_v46 = vsel %vm308_vm2, %v336_v44, %v337_v45 }
  0x3c   : > { %v342_v47 = vadd.f32 %v338_v46, %v316_v42 }
  0x3e   : > { %344 = vst [vmem:[%s281_s8 + $0x8] sm:$0xff] %v342_v47 }
  0x3f   : > { %703 = shalt.err (!%p700_p13)
}
  0x40   : > { %520 = dma.vmem_to_hbm [thread:$0]  (%p839_p9), %s362_s10, 256, %s364_s29, %s346_s9  }
  0x41 PF: > { %s375_s1 = sand.u32 1, %s742_s12   ;;  %p533_p0 = pnand %p494_p12, %p846_p11 }
  0x42   : > { %s376_s20 = scalar_lea.sflag [#allocation4], %s375_s1 }
  0x43   : > { %p534_p1 = pneg %p533_p0 }
  0x45   : > { %737 = dma.done.wait (%p534_p1), %s376_s20, 256  }
  0x46   : > { %739 = vsyncadd (%p534_p1), %s376_s20, 4294967040  ;;  %s22_s17 = sadd.s32 1, %s762_s17   ;;  %s973_s30 = sld [smem:[#allocation13_spill]] }
  0x47   : > { %p19_p2 = scmp.ge.s32.totalorder %s22_s17, 4   ;;  %s974_s25 = sld [smem:[#allocation12_spill]] }
  0x48   : > { %s975_s12 = smov %s746_s13  ;;  %s976_s13 = smov %s750_s14 }
  0x49   : > { %s978_s15 = smov %s758_s16  ;;  %21 = sbr.rel (!%p19_p2) target bundleno = 10 (0xa), region = 101 }
  0x4c   : > { %s977_s14 = smov %s973_s30 }
  0x4d   : > { %s979_s16 = smov %s974_s25 }
  0x4e   :  { %382 = vsyncpa [#allocation3], 1 }
  0x4f   :  { %384 = vsyncpa [#allocation3 + $0x1], 1 }
  0x50   :  { %385 = vsyncpa [#allocation6], 1 }
  0x51   :  { %387 = vsyncpa [#allocation6 + $0x1], 1 }
  0x52   :  { %388 = vsyncpa [#allocation4], 1 }
  0x53   :  { %390 = vsyncpa [#allocation4 + $0x1], 1 }

</bundles_post_ra>
